<compile_context>
chip_gen: v6e
topology: v6e:2x2x1
jax: 0.10.0
libtpu: 0.0.40
codegen_flags: <defaults>
</compile_context>

<pallas_src>
import math

import jax
import jax.numpy as jnp
from jax.experimental import pallas as pl
from jax.experimental.pallas import tpu as pltpu


def _sdp_kernel(q_ref, k_ref, v_ref, mask_ref, out_ref, w_ref):
    # q_ref, k_ref, v_ref: (TB, S, D) blocks of the flattened (B*H, S, D) inputs
    # mask_ref:            (S, S) resident block shared across all grid steps
    # out_ref:             (TB, S, D) attention output block
    # w_ref:               (TB, S, S) attention-weight block (post-softmax)
    d_k = q_ref.shape[-1]
    scale = 1.0 / math.sqrt(d_k)

    q = q_ref[...].astype(jnp.float32)
    k = k_ref[...].astype(jnp.float32)
    v = v_ref[...].astype(jnp.float32)

    # scores = q @ k^T / sqrt(d_k)   (batched over the TB head dim; MXU)
    scores = jnp.einsum("bqd,bkd->bqk", q, k,
                        preferred_element_type=jnp.float32) * scale

    # masked_fill(mask == 0, -1e9)
    mask = mask_ref[...]
    scores = jnp.where(mask[None, :, :] == 0, -1000000000.0, scores)

    # numerically stable softmax along the key axis
    m = jnp.max(scores, axis=-1, keepdims=True)
    e = jnp.exp(scores - m)
    w = e / jnp.sum(e, axis=-1, keepdims=True)

    # TODO(synk): training-mode nn.Dropout on attention_weights is not applied
    # (eval-mode / dropout=None semantics; torch's RNG stream is not reproducible here).

    w_ref[...] = w.astype(w_ref.dtype)
    out_ref[...] = jnp.einsum("bqk,bkd->bqd", w, v,
                              preferred_element_type=jnp.float32
                              ).astype(out_ref.dtype)


def _pick_block_heads(bh, s, d, dtype_bytes, budget_bytes=8 * 1024 * 1024):
    """Largest head-block (divisor of bh) whose double-buffered footprint fits budget."""
    per_head = (4 * s * d + s * s) * dtype_bytes * 2  # q,k,v,out + weights, 2x buffered
    tb = max(1, min(bh, budget_bytes // max(per_head, 1)))
    while bh % tb != 0:
        tb -= 1
    return tb


def scaled_dot_product(k, q, v, mask=None):
    """Pallas TPU implementation of ScaledDotProduct.forward (eval mode).

    k, q, v: (B, H, S, D).  mask: (S, S) shared across batch/heads, or None.
    Returns (attention_output (B, H, S, D), attention_weights (B, H, S, S)).
    """
    B, H, S, D = q.shape
    BH = B * H
    qf = q.reshape(BH, S, D)
    kf = k.reshape(BH, S, D)
    vf = v.reshape(BH, S, D)

    if mask is None:
        mask = jnp.ones((S, S), dtype=jnp.float32)
    mask = jnp.asarray(mask).reshape(S, S)

    tb = _pick_block_heads(BH, S, D, jnp.dtype(q.dtype).itemsize)
    grid = (BH // tb,)

    out_f, w_f = pl.pallas_call(
        _sdp_kernel,
        out_shape=(
            jax.ShapeDtypeStruct((BH, S, D), q.dtype),
            jax.ShapeDtypeStruct((BH, S, S), q.dtype),
        ),
        grid=grid,
        in_specs=[
            pl.BlockSpec((tb, S, D), lambda i: (i, 0, 0)),   # q block
            pl.BlockSpec((tb, S, D), lambda i: (i, 0, 0)),   # k block
            pl.BlockSpec((tb, S, D), lambda i: (i, 0, 0)),   # v block
            pl.BlockSpec((S, S), lambda i: (0, 0)),          # mask (resident)
        ],
        out_specs=(
            pl.BlockSpec((tb, S, D), lambda i: (i, 0, 0)),   # attention output
            pl.BlockSpec((tb, S, S), lambda i: (i, 0, 0)),   # attention weights
        ),
        compiler_params=pltpu.CompilerParams(
            dimension_semantics=("parallel",),
        ),
    )(qf, kf, vf, mask)

    return out_f.reshape(B, H, S, D), w_f.reshape(B, H, S, S)


def sdp_reference(k, q, v, mask=None):
    """Pure-JAX transcription of the PyTorch forward (for verification)."""
    d_k = q.shape[-1]
    scores = jnp.einsum("...qd,...kd->...qk", q, k) / math.sqrt(d_k)
    if mask is not None:
        scores = jnp.where(mask == 0, -1000000000.0, scores)
    w = jax.nn.softmax(scores, axis=-1)
    out = jnp.einsum("...qk,...kd->...qd", w, v)
    return out, w


if __name__ == "__main__":
    # Small shapes: batch=2, heads=2, seq=8, head_dim=32
    B, H, S, D = 2, 2, 8, 32

    key = jax.random.PRNGKey(0)
    kk, kq, kv = jax.random.split(key, 3)
    k = jax.random.normal(kk, (B, H, S, D), dtype=jnp.float32)
    q = jax.random.normal(kq, (B, H, S, D), dtype=jnp.float32)
    v = jax.random.normal(kv, (B, H, S, D), dtype=jnp.float32)
    mask = jnp.tril(jnp.ones((S, S), dtype=jnp.float32))  # causal mask example

    out, w = scaled_dot_product(k, q, v, mask)
    out = jax.block_until_ready(out)
    w = jax.block_until_ready(w)

    ref_out, ref_w = sdp_reference(k, q, v, mask)
    assert out.shape == (B, H, S, D) and w.shape == (B, H, S, S)
    assert jnp.allclose(out, ref_out, atol=1e-5, rtol=1e-5), "output mismatch vs reference"
    assert jnp.allclose(w, ref_w, atol=1e-5, rtol=1e-5), "weights mismatch vs reference"

    print("KERNEL_OK")
</pallas_src>

<mosaic_0001>
module attributes {stable_mosaic.version = 11 : i64} {
  func.func @_sdp_kernel(%arg0: i32, %arg1: memref<4x8x32xf32, #tpu.memory_space<vmem>>, %arg2: memref<4x8x32xf32, #tpu.memory_space<vmem>>, %arg3: memref<4x8x32xf32, #tpu.memory_space<vmem>>, %arg4: memref<8x8xf32, #tpu.memory_space<vmem>>, %arg5: memref<4x8x32xf32, #tpu.memory_space<vmem>>, %arg6: memref<4x8x8xf32, #tpu.memory_space<vmem>>) attributes {dimension_semantics = [#tpu.dimension_semantics<parallel>], iteration_bounds = array<i64: 1>, scalar_prefetch = 0 : i64, scratch_operands = 0 : i64, tpu.core_type = #tpu.core_type<tc>, window_params = [{transform_indices = @transform_0, window_bounds = array<i64: 4, 8, 32>}, {transform_indices = @transform_1, window_bounds = array<i64: 4, 8, 32>}, {transform_indices = @transform_2, window_bounds = array<i64: 4, 8, 32>}, {pipeline_mode = #tpu.pipeline_mode<synchronous>, transform_indices = @transform_3, window_bounds = array<i64: 8, 8>}, {transform_indices = @transform_4, window_bounds = array<i64: 4, 8, 32>}, {transform_indices = @transform_5, window_bounds = array<i64: 4, 8, 8>}]} {
    %c0 = arith.constant 0 : index
    %c0_0 = arith.constant 0 : index
    %c0_1 = arith.constant 0 : index
    %0 = vector.load %arg1[%c0, %c0_0, %c0_1] : memref<4x8x32xf32, #tpu.memory_space<vmem>>, vector<4x8x32xf32>
    %c0_2 = arith.constant 0 : index
    %c0_3 = arith.constant 0 : index
    %c0_4 = arith.constant 0 : index
    %1 = vector.load %arg2[%c0_2, %c0_3, %c0_4] : memref<4x8x32xf32, #tpu.memory_space<vmem>>, vector<4x8x32xf32>
    %c0_5 = arith.constant 0 : index
    %c0_6 = arith.constant 0 : index
    %c0_7 = arith.constant 0 : index
    %2 = vector.load %arg3[%c0_5, %c0_6, %c0_7] : memref<4x8x32xf32, #tpu.memory_space<vmem>>, vector<4x8x32xf32>
    "tpu.trace_start"() <{level = 10 : i32, message = "bqd,bkd->bqk"}> : () -> ()
    %cst = arith.constant dense<0.000000e+00> : vector<4x8x8xf32>
    %3 = tpu.matmul %0, %1, %cst {dimension_numbers = #tpu.dot_dimension_numbers<[2], [2], [1], [1], [0, 0, 0, 1, 1, 1], [0], [0]>} : vector<4x8x32xf32>, vector<4x8x32xf32>, vector<4x8x8xf32> -> vector<4x8x8xf32>
    "tpu.trace_stop"() : () -> ()
    %cst_8 = arith.constant 0.176776692 : f32
    %4 = vector.broadcast %cst_8 : f32 to vector<4x8x8xf32>
    %5 = arith.mulf %3, %4 : vector<4x8x8xf32>
    %c0_9 = arith.constant 0 : index
    %c0_10 = arith.constant 0 : index
    %6 = vector.load %arg4[%c0_9, %c0_10] : memref<8x8xf32, #tpu.memory_space<vmem>>, vector<8x8xf32>
    %7 = vector.shape_cast %6 : vector<8x8xf32> to vector<1x8x8xf32>
    %cst_11 = arith.constant 0.000000e+00 : f32
    %8 = vector.broadcast %cst_11 : f32 to vector<1x8x8xf32>
    %9 = arith.cmpf oeq, %7, %8 : vector<1x8x8xf32>
    %cst_12 = arith.constant -1.000000e+09 : f32
    %10 = vector.shape_cast %9 : vector<1x8x8xi1> to vector<1x8x8xi1>
    %11 = vector.broadcast %10 : vector<1x8x8xi1> to vector<4x8x8xi1>
    %12 = vector.broadcast %cst_12 : f32 to vector<4x8x8xf32>
    %13 = arith.select %11, %12, %5 : vector<4x8x8xi1>, vector<4x8x8xf32>
    %cst_13 = arith.constant dense<0xFF800000> : vector<4x8xf32>
    %14 = vector.multi_reduction <maximumf>, %13, %cst_13 [2] : vector<4x8x8xf32> to vector<4x8xf32>
    %15 = vector.shape_cast %14 : vector<4x8xf32> to vector<4x8x1xf32>
    %16 = vector.broadcast %15 : vector<4x8x1xf32> to vector<4x8x8xf32>
    %17 = arith.subf %13, %16 : vector<4x8x8xf32>
    %18 = math.exp %17 : vector<4x8x8xf32>
    %cst_14 = arith.constant dense<0.000000e+00> : vector<4x8xf32>
    %19 = vector.multi_reduction <add>, %18, %cst_14 [2] : vector<4x8x8xf32> to vector<4x8xf32>
    %20 = vector.shape_cast %19 : vector<4x8xf32> to vector<4x8x1xf32>
    %21 = vector.broadcast %20 : vector<4x8x1xf32> to vector<4x8x8xf32>
    %22 = arith.divf %18, %21 : vector<4x8x8xf32>
    %c0_15 = arith.constant 0 : index
    %c0_16 = arith.constant 0 : index
    %c0_17 = arith.constant 0 : index
    %23 = vector.load %arg6[%c0_15, %c0_16, %c0_17] : memref<4x8x8xf32, #tpu.memory_space<vmem>>, vector<4x8x8xf32>
    tpu.vector_store %arg6[%c0_15, %c0_16, %c0_17], %22 {strides = array<i32>} : memref<4x8x8xf32, #tpu.memory_space<vmem>>, vector<4x8x8xf32>,
    "tpu.trace_start"() <{level = 10 : i32, message = "bqk,bkd->bqd"}> : () -> ()
    %cst_18 = arith.constant dense<0.000000e+00> : vector<4x8x32xf32>
    %24 = tpu.matmul %22, %2, %cst_18 {dimension_numbers = #tpu.dot_dimension_numbers<[2], [1], [1], [2], [0, 0, 0, 1, 1, 2], [0], [0]>} : vector<4x8x8xf32>, vector<4x8x32xf32>, vector<4x8x32xf32> -> vector<4x8x32xf32>
    "tpu.trace_stop"() : () -> ()
    %c0_19 = arith.constant 0 : index
    %c0_20 = arith.constant 0 : index
    %c0_21 = arith.constant 0 : index
    %25 = vector.load %arg5[%c0_19, %c0_20, %c0_21] : memref<4x8x32xf32, #tpu.memory_space<vmem>>, vector<4x8x32xf32>
    tpu.vector_store %arg5[%c0_19, %c0_20, %c0_21], %24 {strides = array<i32>} : memref<4x8x32xf32, #tpu.memory_space<vmem>>, vector<4x8x32xf32>,
    return
  }
  func.func @transform_0(%arg0: i32) -> (i32, i32, i32) {
    %c0_i32 = arith.constant 0 : i32
    %c0_i32_0 = arith.constant 0 : i32
    %c0_i32_1 = arith.constant 0 : i32
    return %arg0, %c0_i32, %c0_i32_0 : i32, i32, i32
  }
  func.func @transform_1(%arg0: i32) -> (i32, i32, i32) {
    %c0_i32 = arith.constant 0 : i32
    %c0_i32_0 = arith.constant 0 : i32
    %c0_i32_1 = arith.constant 0 : i32
    return %arg0, %c0_i32, %c0_i32_0 : i32, i32, i32
  }
  func.func @transform_2(%arg0: i32) -> (i32, i32, i32) {
    %c0_i32 = arith.constant 0 : i32
    %c0_i32_0 = arith.constant 0 : i32
    %c0_i32_1 = arith.constant 0 : i32
    return %arg0, %c0_i32, %c0_i32_0 : i32, i32, i32
  }
  func.func @transform_3(%arg0: i32) -> (i32, i32) {
    %c0_i32 = arith.constant 0 : i32
    %c0_i32_0 = arith.constant 0 : i32
    %c0_i32_1 = arith.constant 0 : i32
    return %c0_i32, %c0_i32_0 : i32, i32
  }
  func.func @transform_4(%arg0: i32) -> (i32, i32, i32) {
    %c0_i32 = arith.constant 0 : i32
    %c0_i32_0 = arith.constant 0 : i32
    %c0_i32_1 = arith.constant 0 : i32
    return %arg0, %c0_i32, %c0_i32_0 : i32, i32, i32
  }
  func.func @transform_5(%arg0: i32) -> (i32, i32, i32) {
    %c0_i32 = arith.constant 0 : i32
    %c0_i32_0 = arith.constant 0 : i32
    %c0_i32_1 = arith.constant 0 : i32
    return %arg0, %c0_i32, %c0_i32_0 : i32, i32, i32
  }
}

</mosaic_0001>

<bundles_post_ra>
// kernel: tpu_custom_call.1
= control target key start
LH: loop header
LB: loop body
LE: loop exit
PB: predicated region body
PF: predicated region fallthrough
CT: control target
= control target key end

     0   :  { %11 = vsyncpa [#allocation3], 0  ;;  %s1136_s0 = inlined_call_operand.hbm [shape: f32[4,8,32], index: 0, kind: input, shape index: {}]   ;;  %s1137_s1 = inlined_call_operand.hbm [shape: f32[4,8,32], index: 1, kind: input, shape index: {}]   ;;  %s1138_s2 = inlined_call_operand.hbm [shape: f32[4,8,32], index: 2, kind: input, shape index: {}]   ;;  %s1139_s3 = inlined_call_operand.hbm [shape: f32[8,8], index: 3, kind: input, shape index: {}]   ;;  %s1140_s4 = inlined_call_operand.hbm [shape: f32[4,8,32], index: 4, kind: output, shape index: {0}]   ;;  %s1141_s5 = inlined_call_operand.hbm [shape: f32[4,8,8], index: 5, kind: output, shape index: {1}]  }
   0x1   :  { %12 = vsyncpa [#allocation6], 0 }
   0x2   :  { %13 = vsyncpa [#allocation9], 0 }
   0x3   :  { %14 = vsyncpa [#allocation4], 0 }
   0x4   :  { %15 = vsyncpa [#allocation12], 0  ;;  %s1007_s18 = smov [#allocation5]   ;;  %s1008_s20 = smov [#allocation2]  }
   0x5   :  { %s33_s19 = sshll.u32 %s1007_s18, 4  ;;  %s21_s21 = sshll.u32 %s1008_s20, 4  ;;  %s34_s19 = int_to_ptr.vmem [resolvable:$true] %s33_s19  ;;  %s22_s21 = int_to_ptr.vmem [resolvable:$true] %s21_s21 }
   0x6   :  { %s885_s22 = scalar_lea.vmem %s34_s19, 512  ;;  %p890_p1 = scmp.lt.s32.totalorder %s34_s19, %s34_s19 }
   0x7   :  { %p886_p0 = scmp.ne.s32.totalorder %s34_s19, %s885_s22  ;;  %p891_p2 = scmp.lt.s32.totalorder %s885_s22, %s885_s22 }
   0x9   :  { %p892_p3 = por %p891_p2, %p890_p1 }
   0xb   :  { %p893_p4 = pnand %p892_p3, %p886_p0 }
   0xd   :  { %896 = shalt.err (!%p893_p4)
}
   0xe   :  { %s1009_s23 = smov 128   ;;  %s1010_s24 = smov 8  }
   0xf   :  { %39 = dma.hbm_to_vmem [thread:$0]  %s1137_s1, 512, %s34_s19, [#allocation6], %s1009_s23, %s1009_s23, %s1010_s24  }
  0x10   :  { %s905_s27 = scalar_lea.vmem %s22_s21, 512  ;;  %p910_p6 = scmp.lt.s32.totalorder %s22_s21, %s22_s21 }
  0x11   :  { %p906_p5 = scmp.ne.s32.totalorder %s22_s21, %s905_s27  ;;  %p911_p7 = scmp.lt.s32.totalorder %s905_s27, %s905_s27 }
  0x13   :  { %p912_p8 = por %p911_p7, %p910_p6 }
  0x15   :  { %p913_p9 = pnand %p912_p8, %p906_p5 }
  0x17   :  { %916 = shalt.err (!%p913_p9)
}
  0x18   :  { %27 = dma.hbm_to_vmem [thread:$0]  %s1136_s0, 512, %s22_s21, [#allocation3], %s1009_s23, %s1009_s23, %s1010_s24  }
  0x19   :  { %s1011_s30 = smov [#allocation7]   ;;  %s1012_s7 = smov [#allocation8]  }
  0x1a   :  { %s45_s6 = sshll.u32 %s1011_s30, 4  ;;  %s58_s8 = sshll.u32 %s1012_s7, 4  ;;  %s46_s6 = int_to_ptr.vmem [resolvable:$true] %s45_s6  ;;  %s59_s8 = int_to_ptr.vmem [resolvable:$true] %s58_s8 }
  0x1b   :  { %s925_s1 = scalar_lea.vmem %s46_s6, 512  ;;  %p930_p11 = scmp.lt.s32.totalorder %s46_s6, %s46_s6 }
  0x1c   :  { %p926_p10 = scmp.ne.s32.totalorder %s46_s6, %s925_s1  ;;  %p931_p12 = scmp.lt.s32.totalorder %s925_s1, %s925_s1 }
  0x1e   :  { %p932_p13 = por %p931_p12, %p930_p11 }
  0x20   :  { %p933_p0 = pnand %p932_p13, %p926_p10 }
  0x22   :  { %936 = shalt.err (!%p933_p0)
}
  0x23   :  { %51 = dma.hbm_to_vmem [thread:$0]  %s1138_s2, 512, %s46_s6, [#allocation6], %s1009_s23, %s1009_s23, %s1010_s24  }
  0x24   :  { %s945_s0 = scalar_lea.vmem %s59_s8, 128  ;;  %p950_p2 = scmp.lt.s32.totalorder %s59_s8, %s59_s8 }
  0x25   :  { %p946_p1 = scmp.ne.s32.totalorder %s59_s8, %s945_s0  ;;  %p951_p3 = scmp.lt.s32.totalorder %s945_s0, %s945_s0 }
  0x27   :  { %p952_p4 = por %p951_p3, %p950_p2 }
  0x29   :  { %p953_p5 = pnand %p952_p4, %p946_p1 }
  0x2b   :  { %956 = shalt.err (!%p953_p5)
}
  0x2c   :  { %61 = dma.hbm_to_vmem [thread:$0]  %s1139_s3, 128, %s59_s8, [#allocation9]  }
  0x2d   :  { %997 = dma.done.wait [#allocation3], 512  }
  0x2e   :  { %998 = vsyncadd [#allocation3], 4294966784 }
  0x2f   :  { %999 = dma.done.wait [#allocation6], 1024  }
  0x30   :  { %1000 = vsyncadd [#allocation6], 4294966272 }
  0x31   :  { %1001 = dma.done.wait [#allocation9], 128  }
  0x32   :  { %1002 = vsyncadd [#allocation9], 4294967168  ;;  %v1013_v0 = vmov 0.0   ;;  %vm1014_vm0 = vmmov 0   ;;  %vm86_vm1 = vcmask 261120   ;;  %v78_v1 = vld [vmem:[#allocation5] sm:$0xff] }
  0x33   :  { %811 = vmatprep.subr.mxu0 %v1013_v0  ;;  %813 = vmatprep.mubr.msk.f32.mxu0 %vm1014_vm0, %v1013_v0  ;;  %v79_v2 = vld [vmem:[#allocation5 + $0x8] sm:$0xff]  ;;  %v74_v3 = vld [vmem:[#allocation2] sm:$0xff]  ;;  %v80_v5 = vld [vmem:[#allocation5 + $0x10] sm:$0xff]  ;;  %vm403_vm3 = vcmask 64512   ;;  %s1015_s2 = smov [#allocation11]  }
  0x34   :  { %816 = vmatprep.subr.mxu1 %v1013_v0  ;;  %818 = vmatprep.mubr.msk.f32.mxu1 %vm1014_vm0, %v1013_v0  ;;  %v75_v4 = vld [vmem:[#allocation2 + $0x8] sm:$0xff]  ;;  %v81_v6 = vld [vmem:[#allocation5 + $0x18] sm:$0xff]  ;;  %v76_v7 = vld [vmem:[#allocation2 + $0x10] sm:$0xff]  ;;  %s765_s3 = sshll.u32 %s1015_s2, 4  ;;  %s766_s3 = int_to_ptr.vmem [resolvable:$true] %s765_s3 }
  0x35   :  { %812 = vmatpush3.xpose.msk.msra.mxu0 %vm86_vm1, %v78_v1  ;;  %817 = vmatpush3.xpose.msk.msra.mxu1 %vm86_vm1, %v79_v2  ;;  %v77_v8 = vld [vmem:[#allocation2 + $0x18] sm:$0xff]  ;;  %v395_v9 = vld [vmem:[#allocation8] sm:$0xff]  ;;  %v83_v51 = vld [vmem:[#allocation7 + $0x8] sm:$0xff]  ;;  %s957_s13 = scalar_lea.vmem %s766_s3, 512  ;;  %p962_p7 = scmp.lt.s32.totalorder %s766_s3, %s766_s3 }
  0x36   :  { %821 = vmatprep.subr.mxu0 %v1013_v0  ;;  %826 = vmatprep.subr.mxu1 %v1013_v0  ;;  %vm396_vm2 = vcmp.eq.f32.partialorder %v395_v9, 0.0  ;;  %v82_v50 = vld [vmem:[#allocation7] sm:$0xff]  ;;  %v84_v58 = vld [vmem:[#allocation7 + $0x10] sm:$0xff]  ;;  %v85_v62 = vld [vmem:[#allocation7 + $0x18] sm:$0xff]  ;;  %p958_p6 = scmp.ne.s32.totalorder %s766_s3, %s957_s13  ;;  %p963_p8 = scmp.lt.s32.totalorder %s957_s13, %s957_s13 }
  0x38   :  { %814 = vmatmul.mubr.msk.f32.vlgmr.msra.gmra.mxu0 %vm86_vm1, %v74_v3  ;;  %819 = vmatmul.mubr.msk.f32.vlgmr.msra.gmra.mxu1 %vm86_vm1, %v75_v4  ;;  %p964_p9 = por %p963_p8, %p962_p7 }
  0x39   :  { %822 = vmatpush3.xpose.msk.msra.mxu0 %vm86_vm1, %v80_v5  ;;  %823 = vmatprep.mubr.msk.f32.mxu0 %vm1014_vm0, %v1013_v0 }
  0x3a   :  { %827 = vmatpush3.xpose.msk.msra.mxu1 %vm86_vm1, %v81_v6  ;;  %828 = vmatprep.mubr.msk.f32.mxu1 %vm1014_vm0, %v1013_v0  ;;  %p965_p10 = pnand %p964_p9, %p958_p6 }
  0x3b   :  { %831 = vmatprep.subr.mxu0 %v1013_v0  ;;  %836 = vmatprep.subr.mxu1 %v1013_v0 }
  0x3c   :  { %824 = vmatmul.mubr.msk.f32.vlgmr.msra.gmra.mxu0 %vm86_vm1, %v76_v7 }
  0x3d   :  { %829 = vmatmul.mubr.msk.f32.vlgmr.msra.gmra.mxu1 %vm86_vm1, %v77_v8  ;;  %833 = vmatprep.mubr.msk.f32.mxu0 %vm1014_vm0, %v1013_v0 }
  0x3e   :  { %838 = vmatprep.mubr.msk.f32.mxu1 %vm1014_vm0, %v1013_v0  ;;  %832 = vmatpush3.msra.mxu0 %v82_v50 }
  0x3f   :  { %841 = vmatprep.subr.mxu0 %v1013_v0  ;;  %837 = vmatpush3.msra.mxu1 %v83_v51 }
  0x40   :  { %846 = vmatprep.subr.mxu1 %v1013_v0 }
  0xf8   :  { %v159_v10 = vpop.f32.mrf.mxu0  ;;  %v235_v11 = vpop.f32.mrf.mxu1 }
  0xf9   :  { %v391_v12 = vmul.f32 0.17677669, %v159_v10  ;;  %v392_v13 = vmul.f32 0.17677669, %v235_v11 }
  0xfa   :  { %v815_v14 = vpop.f32.mrf.mxu0  ;;  %v820_v15 = vpop.f32.mrf.mxu1 }
  0xfb   :  { %v399_v16 = vsel %vm396_vm2, -1e+09, %v391_v12  ;;  %v400_v17 = vsel %vm396_vm2, -1e+09, %v392_v13 }
  0xfc   :  { %v311_v18 = vpop.f32.mrf.mxu0  ;;  %v404_v19 = vsel %vm403_vm3, %v399_v16, -inf  ;;  %v407_v24 = vsel %vm403_vm3, %v400_v17, -inf }
  0xfd   :  { %v393_v20 = vmul.f32 0.17677669, %v311_v18  ;;  %405 = vmax.xlane.f32.xlu0 %v404_v19  ;;  %v387_v21 = vpop.f32.mrf.mxu1 }
  0xfe   :  { %v825_v22 = vpop.f32.mrf.mxu0  ;;  %v394_v23 = vmul.f32 0.17677669, %v387_v21 }
  0xff   :  { %v830_v25 = vpop.f32.mrf.mxu1  ;;  %v401_v26 = vsel %vm396_vm2, -1e+09, %v393_v20 }
 0x100   :  { %v410_v27 = vsel %vm403_vm3, %v401_v26, -inf  ;;  %v402_v28 = vsel %vm396_vm2, -1e+09, %v394_v23 }
 0x101   :  { %408 = vmax.xlane.f32.xlu0 %v407_v24  ;;  %411 = vmax.xlane.f32.xlu1 %v410_v27  ;;  %v413_v29 = vsel %vm403_vm3, %v402_v28, -inf }
 0x105   :  { %414 = vmax.xlane.f32.xlu1 %v413_v29 }
 0x186   :  { %v406_v30 = vpop.xlane.xlu0 %405 }
 0x187   :  { %v416_v31 = vsub.f32 %v399_v16, %v406_v30 }
 0x189   :  { %v420_v32 = vmul.f32 1.442695, %v416_v31 }
 0x18a   :  { %v409_v33 = vpop.xlane.xlu0 %408  ;;  %v412_v34 = vpop.xlane.xlu1 %411 }
 0x18b   :  { %861 = vpow2.f32 %v420_v32  ;;  %v417_v35 = vsub.f32 %v400_v17, %v409_v33  ;;  %v418_v36 = vsub.f32 %v401_v26, %v412_v34 }
 0x18d   :  { %v422_v37 = vmul.f32 1.442695, %v417_v35  ;;  %v424_v38 = vmul.f32 1.442695, %v418_v36 }
 0x18e   :  { %v415_v39 = vpop.xlane.xlu1 %414 }
 0x18f   :  { %863 = vpow2.f32 %v422_v37  ;;  %v419_v40 = vsub.f32 %v402_v28, %v415_v39 }
 0x190   :  { %865 = vpow2.f32 %v424_v38 }
 0x191   :  { %v426_v41 = vmul.f32 1.442695, %v419_v40 }
 0x193   :  { %867 = vpow2.f32 %v426_v41 }
 0x198   :  { %v862_v42 = vpop.eup %861 }
 0x199   :  { %v428_v43 = vsel %vm403_vm3, %v862_v42, 0.0 }
 0x19a   :  { %429 = vadd.xlane.f32.xlu0 %v428_v43 }
 0x19c   :  { %v864_v44 = vpop.eup %863 }
 0x19d   :  { %v866_v45 = vpop.eup %865  ;;  %v431_v46 = vsel %vm403_vm3, %v864_v44, 0.0 }
 0x19e   :  { %432 = vadd.xlane.f32.xlu1 %v431_v46  ;;  %v434_v47 = vsel %vm403_vm3, %v866_v45, 0.0 }
 0x19f   :  { %435 = vadd.xlane.f32.xlu0 %v434_v47 }
 0x1a0   :  { %v868_v48 = vpop.eup %867 }
 0x1a1   :  { %v437_v49 = vsel %vm403_vm3, %v868_v48, 0.0 }
 0x1a2   :  { %438 = vadd.xlane.f32.xlu1 %v437_v49 }
 0x223   :  { %v430_v52 = vpop.xlane.xlu0 %429 }
 0x224   :  { %869 = vrcp.f32 %v430_v52 }
 0x227   :  { %v433_v53 = vpop.xlane.xlu1 %432 }
 0x228   :  { %v436_v54 = vpop.xlane.xlu0 %435  ;;  %871 = vrcp.f32 %v433_v53 }
 0x229   :  { %873 = vrcp.f32 %v436_v54 }
 0x22b   :  { %v439_v55 = vpop.xlane.xlu1 %438 }
 0x22c   :  { %875 = vrcp.f32 %v439_v55 }
 0x231   :  { %v870_v56 = vpop.eup %869 }
 0x232   :  { %v441_v57 = vmul.f32 %v870_v56, %v862_v42 }
 0x234   :  { %834 = vmatmul.mubr.msk.f32.vlgmr.msra.gmra.mxu0 %vm403_vm3, %v441_v57  ;;  %448 = vst.msk [vmem:[#allocation11] sm:$0xff] %vm403_vm3, %v441_v57 }
 0x235   :  { %v872_v59 = vpop.eup %871  ;;  %842 = vmatpush3.msra.mxu0 %v84_v58  ;;  %843 = vmatprep.mubr.msk.f32.mxu0 %vm1014_vm0, %v1013_v0 }
 0x236   :  { %v874_v60 = vpop.eup %873  ;;  %v443_v61 = vmul.f32 %v872_v59, %v864_v44 }
 0x237   :  { %v445_v63 = vmul.f32 %v874_v60, %v866_v45 }
 0x238   :  { %839 = vmatmul.mubr.msk.f32.vlgmr.msra.gmra.mxu1 %vm403_vm3, %v443_v61  ;;  %449 = vst.msk [vmem:[#allocation11 + $0x8] sm:$0xff] %vm403_vm3, %v443_v61 }
 0x239   :  { %v876_v1 = vpop.eup %875  ;;  %844 = vmatmul.mubr.msk.f32.vlgmr.msra.gmra.mxu0 %vm403_vm3, %v445_v63  ;;  %450 = vst.msk [vmem:[#allocation11 + $0x10] sm:$0xff] %vm403_vm3, %v445_v63  ;;  %847 = vmatpush3.msra.mxu1 %v85_v62 }
 0x23a   :  { %848 = vmatprep.mubr.msk.f32.mxu1 %vm1014_vm0, %v1013_v0  ;;  %v447_v2 = vmul.f32 %v876_v1, %v868_v48 }
 0x23c   :  { %849 = vmatmul.mubr.msk.f32.vlgmr.msra.gmra.mxu1 %vm403_vm3, %v447_v2  ;;  %451 = vst.msk [vmem:[#allocation11 + $0x18] sm:$0xff] %vm403_vm3, %v447_v2 }
 0x23d   :  { %968 = shalt.err (!%p965_p10)
}
 0x23e   :  { %771 = dma.vmem_to_hbm [thread:$0]  %s766_s3, 512, %s1141_s5, [#allocation12], %s1009_s23, %s1009_s23, %s1010_s24  }
 0x23f   :  { %s1016_s16 = smov [#allocation10]  }
 0x240   :  { %s753_s17 = sshll.u32 %s1016_s16, 4  ;;  %s754_s17 = int_to_ptr.vmem [resolvable:$true] %s753_s17 }
 0x241   :  { %s977_s5 = scalar_lea.vmem %s754_s17, 512  ;;  %p982_p12 = scmp.lt.s32.totalorder %s754_s17, %s754_s17 }
 0x242   :  { %p978_p11 = scmp.ne.s32.totalorder %s754_s17, %s977_s5  ;;  %p983_p13 = scmp.lt.s32.totalorder %s977_s5, %s977_s5 }
 0x244   :  { %p984_p0 = por %p983_p13, %p982_p12 }
 0x246   :  { %p985_p1 = pnand %p984_p0, %p978_p11 }
 0x2f4   :  { %v521_v0 = vpop.f32.mrf.mxu0 }
 0x2f5   :  { %744 = vst.msk [vmem:[#allocation10] sm:$0xff] %vm86_vm1, %v521_v0 }
 0x2f6   :  { %v835_v3 = vpop.f32.mrf.mxu0 }
 0x2f8   :  { %v594_v4 = vpop.f32.mrf.mxu1 }
 0x2f9   :  { %745 = vst.msk [vmem:[#allocation10 + $0x8] sm:$0xff] %vm86_vm1, %v594_v4  ;;  %v667_v5 = vpop.f32.mrf.mxu0 }
 0x2fa   :  { %746 = vst.msk [vmem:[#allocation10 + $0x10] sm:$0xff] %vm86_vm1, %v667_v5  ;;  %v840_v6 = vpop.f32.mrf.mxu1 }
 0x2fb   :  { %v845_v7 = vpop.f32.mrf.mxu0 }
 0x2fc   :  { %v740_v8 = vpop.f32.mrf.mxu1 }
 0x2fd   :  { %747 = vst.msk [vmem:[#allocation10 + $0x18] sm:$0xff] %vm86_vm1, %v740_v8 }
 0x2fe   :  { %v850_v9 = vpop.f32.mrf.mxu1 }
 0x2ff   :  { %988 = shalt.err (!%p985_p1)
}
 0x300   :  { %759 = dma.vmem_to_hbm [thread:$0]  %s754_s17, 512, %s1140_s4, [#allocation4], %s1009_s23, %s1009_s23, %s1010_s24  }
 0x301   :  { %1003 = dma.done.wait [#allocation4], 512  }
 0x302   :  { %1004 = vsyncadd [#allocation4], 4294966784 }
 0x303   :  { %1005 = dma.done.wait [#allocation12], 512  }
 0x304   :  { %1006 = vsyncadd [#allocation12], 4294966784 }
 0x305   :  { %778 = vsyncpa [#allocation3], 1 }
 0x306   :  { %779 = vsyncpa [#allocation6], 1 }
 0x307   :  { %780 = vsyncpa [#allocation9], 1 }
 0x308   :  { %781 = vsyncpa [#allocation4], 1 }
 0x309   :  { %782 = vsyncpa [#allocation12], 1 }

</bundles_post_ra>
